<compile_context>
chip_gen: v6e
topology: v6e:2x2x1
jax: 0.10.0
libtpu: 0.0.40
codegen_flags: <defaults>
</compile_context>

<pallas_src>
import functools
import math

import jax
import jax.numpy as jnp
from jax.experimental import pallas as pl
from jax.experimental.pallas import tpu as pltpu

_LANE = 128
_NEG_BIG = -1e30  # large finite negative: exp() underflows to 0, no inf/nan arithmetic


# --------------------------------------------------------------------------- kernels
def _gcn_layer1_kernel(adj_ref, x_ref, w1_ref, b1_ref, h_ref):
    """h[rows] = relu(adj[rows, :] @ (x @ W1) + b1), one node-row tile per grid step."""
    # support = x @ W1 is tiny (N x IN x HID); recomputing it per row tile is far
    # cheaper than the N x N aggregation and avoids an extra HBM round-trip.
    support = jnp.dot(x_ref[...], w1_ref[...],
                      preferred_element_type=jnp.float32).astype(jnp.bfloat16)
    h = jnp.dot(adj_ref[...], support, preferred_element_type=jnp.float32)
    h = jnp.maximum(h + b1_ref[...], 0.0)          # bias add + relu in f32
    # dropout between layers: identity in eval mode.
    # TODO(synk): training-mode dropout (pltpu.prng_*) not needed on this inference path.
    h_ref[...] = h.astype(h_ref.dtype)             # bf16: halves HBM traffic, feeds MXU


def _gcn_layer2_kernel(adj_ref, h_ref, w2_ref, b2_ref, o_ref, *, out_channels):
    """o[rows] = log_softmax(adj[rows,:] @ (h @ W2p) + b2p) on a lane-dense 128 slab."""
    support = jnp.dot(h_ref[...], w2_ref[...],
                      preferred_element_type=jnp.float32).astype(jnp.bfloat16)
    z = jnp.dot(adj_ref[...], support, preferred_element_type=jnp.float32) + b2_ref[...]
    # Padded lanes must not contribute to the row-wise max / sum reductions.
    col = jax.lax.broadcasted_iota(jnp.int32, z.shape, dimension=1)
    z = jnp.where(col < out_channels, z, _NEG_BIG)
    m = jnp.max(z, axis=1, keepdims=True)
    shifted = z - m
    lse = jnp.log(jnp.sum(jnp.exp(shifted), axis=1, keepdims=True))
    o_ref[...] = (shifted - lse).astype(o_ref.dtype)


# --------------------------------------------------------------------------- wrapper
def _pick_row_tile(n_nodes, requested=None, adj_budget_bytes=24 << 20):
    """Largest node-row tile (multiple of 8, <=512) whose double-buffered bf16 adj
    slab (2 * tm * N * 2 bytes) fits the budget — re-derived per N so the same code
    also respects v7x's 64 MiB VMEM."""
    tm = min(requested if requested is not None else 512, n_nodes)
    if tm < n_nodes:
        tm = max(8, (tm // 8) * 8)
    while tm > 8 and 2 * tm * n_nodes * 2 > adj_budget_bytes:
        tm = max(8, tm // 2)
    return tm


def gcn_forward(x, adj, w1, b1, w2, b2, *, row_tile=None):
    n, in_features = x.shape
    hid_features = w1.shape[1]
    out_features = w2.shape[1]
    np_lanes = max(_LANE, ((out_features + _LANE - 1) // _LANE) * _LANE)

    tm = _pick_row_tile(n, row_tile)
    grid = (pl.cdiv(n, tm),)
    num_tiles = grid[0]

    # bf16 MXU operands (f32 accumulation happens inside the kernels).
    adj_bf = adj.astype(jnp.bfloat16)
    x_bf = x.astype(jnp.bfloat16)
    w1_bf = w1.astype(jnp.bfloat16)
    b1_2d = b1.reshape(1, -1).astype(jnp.float32)
    # W2 / b2 padded to a lane-dense 128-wide output slab (extra columns are zero;
    # they are masked to -1e30 inside the kernel before the softmax reductions).
    w2_pad = jnp.zeros((hid_features, np_lanes), jnp.bfloat16)
    w2_pad = w2_pad.at[:, :out_features].set(w2.astype(jnp.bfloat16))
    b2_pad = jnp.zeros((1, np_lanes), jnp.float32)
    b2_pad = b2_pad.at[:, :out_features].set(b2.astype(jnp.float32))

    compiler_params = pltpu.CompilerParams(
        dimension_semantics=("parallel",),   # shard node-row axis across v7x's 2 TCs
        vmem_limit_bytes=48 << 20,           # stays under v7x's 64 MiB physical VMEM
    )

    # ---- layer 1: h = relu(adj @ (x @ W1) + b1) --------------------------------
    cost1 = pl.CostEstimate(
        flops=2 * n * n * hid_features + 2 * num_tiles * n * in_features * hid_features,
        transcendentals=0,
        bytes_accessed=(n * n * 2 + n * in_features * 2
                        + in_features * hid_features * 2 + hid_features * 4
                        + n * hid_features * 2),
    )
    h = pl.pallas_call(
        _gcn_layer1_kernel,
        out_shape=jax.ShapeDtypeStruct((n, hid_features), jnp.bfloat16),
        grid=grid,
        in_specs=[
            pl.BlockSpec((tm, n), lambda i: (i, 0)),               # adj rows, streamed
            pl.BlockSpec((n, in_features), lambda i: (0, 0)),      # x, resident
            pl.BlockSpec((in_features, hid_features), lambda i: (0, 0)),
            pl.BlockSpec((1, hid_features), lambda i: (0, 0)),
        ],
        out_specs=pl.BlockSpec((tm, hid_features), lambda i: (i, 0)),
        compiler_params=compiler_params,
        cost_estimate=cost1,
    )(adj_bf, x_bf, w1_bf, b1_2d)

    # ---- layer 2: log_softmax(adj @ (h @ W2) + b2), lane-dense slab ------------
    cost2 = pl.CostEstimate(
        flops=2 * n * n * np_lanes + 2 * num_tiles * n * hid_features * np_lanes,
        transcendentals=n * np_lanes + n,
        bytes_accessed=(n * n * 2 + n * hid_features * 2
                        + hid_features * np_lanes * 2 + np_lanes * 4
                        + n * np_lanes * 4),
    )
    out_padded = pl.pallas_call(
        functools.partial(_gcn_layer2_kernel, out_channels=out_features),
        out_shape=jax.ShapeDtypeStruct((n, np_lanes), jnp.float32),
        grid=grid,
        in_specs=[
            pl.BlockSpec((tm, n), lambda i: (i, 0)),               # adj rows, streamed
            pl.BlockSpec((n, hid_features), lambda i: (0, 0)),     # h, resident
            pl.BlockSpec((hid_features, np_lanes), lambda i: (0, 0)),
            pl.BlockSpec((1, np_lanes), lambda i: (0, 0)),
        ],
        out_specs=pl.BlockSpec((tm, np_lanes), lambda i: (i, 0)),
        compiler_params=compiler_params,
        cost_estimate=cost2,
    )(adj_bf, h, w2_pad, b2_pad)

    return out_padded[:, :out_features]


# --------------------------------------------------------------------------- refs / demo
def init_gc_params(key, in_features, out_features):
    """Matches GraphConvolution.reset_parameters: U(-stdv, stdv), stdv = 1/sqrt(out)."""
    stdv = 1.0 / math.sqrt(out_features)
    kw, kb = jax.random.split(key)
    w = jax.random.uniform(kw, (in_features, out_features), jnp.float32, -stdv, stdv)
    b = jax.random.uniform(kb, (out_features,), jnp.float32, -stdv, stdv)
    return w, b


def reference_forward_f32(x, adj, w1, b1, w2, b2):
    """Pure-f32 plain-JAX reference of the original module's forward."""
    h = jnp.maximum(adj @ (x @ w1) + b1, 0.0)
    z = adj @ (h @ w2) + b2
    return jax.nn.log_softmax(z, axis=1)


def reference_forward_bf16(x, adj, w1, b1, w2, b2):
    """Plain-JAX reference with the same bf16-operand / f32-accumulate casts as the kernels."""
    bf = jnp.bfloat16
    adj_bf, x_bf = adj.astype(bf), x.astype(bf)
    s1 = jnp.dot(x_bf, w1.astype(bf), preferred_element_type=jnp.float32).astype(bf)
    h = jnp.maximum(jnp.dot(adj_bf, s1, preferred_element_type=jnp.float32) + b1, 0.0)
    h_bf = h.astype(bf)
    s2 = jnp.dot(h_bf, w2.astype(bf), preferred_element_type=jnp.float32).astype(bf)
    z = jnp.dot(adj_bf, s2, preferred_element_type=jnp.float32) + b2
    return jax.nn.log_softmax(z, axis=1)


if __name__ == "__main__":
    # Small deterministic example consistent with GCN(in, hid, out, dropout, layer_num=2)
    N = 512
    IN_CHANNELS = 16
    HID_CHANNELS = 32
    OUT_CHANNELS = 8

    key = jax.random.PRNGKey(0)
    k_x, k_adj, k_gc1, k_gc2 = jax.random.split(key, 4)

    # Node features
    x = jax.random.normal(k_x, (N, IN_CHANNELS), jnp.float32)

    # Dense symmetric row-normalized adjacency with self-loops (stand-in for torch.spmm input)
    a = (jax.random.uniform(k_adj, (N, N)) < 0.05).astype(jnp.float32)
    a = jnp.maximum(a, a.T) + jnp.eye(N, dtype=jnp.float32)
    adj = a / jnp.sum(a, axis=1, keepdims=True)

    # Parameters (deterministic init mirroring reset_parameters)
    w1, b1 = init_gc_params(k_gc1, IN_CHANNELS, HID_CHANNELS)
    w2, b2 = init_gc_params(k_gc2, HID_CHANNELS, OUT_CHANNELS)

    # row_tile=128 -> grid=(4,): exercises the row-tiled, double-buffered pipeline.
    out = gcn_forward(x, adj, w1, b1, w2, b2, row_tile=128)
    out = jax.block_until_ready(out)
    assert out.shape == (N, OUT_CHANNELS)

    ref_match = reference_forward_bf16(x, adj, w1, b1, w2, b2)   # same precision recipe
    ref_f32 = reference_forward_f32(x, adj, w1, b1, w2, b2)      # module's exact math
    assert jnp.allclose(out, ref_match, atol=1e-3, rtol=1e-3), \
        float(jnp.max(jnp.abs(out - ref_match)))
    assert jnp.allclose(out, ref_f32, atol=5e-2, rtol=5e-2), \
        float(jnp.max(jnp.abs(out - ref_f32)))

    print("KERNEL_OK")
</pallas_src>

<mosaic_0001>
module attributes {stable_mosaic.version = 11 : i64} {
  func.func @_gcn_layer1_kernel(%arg0: i32, %arg1: memref<128x512xbf16, #tpu.memory_space<vmem>>, %arg2: memref<512x16xbf16, #tpu.memory_space<vmem>>, %arg3: memref<16x32xbf16, #tpu.memory_space<vmem>>, %arg4: memref<1x32xf32, #tpu.memory_space<vmem>>, %arg5: memref<128x32xbf16, #tpu.memory_space<vmem>>) attributes {dimension_semantics = [#tpu.dimension_semantics<parallel>], iteration_bounds = array<i64: 4>, scalar_prefetch = 0 : i64, scratch_operands = 0 : i64, tpu.core_type = #tpu.core_type<tc>, window_params = [{transform_indices = @transform_0, window_bounds = array<i64: 128, 512>}, {pipeline_mode = #tpu.pipeline_mode<synchronous>, transform_indices = @transform_1, window_bounds = array<i64: 512, 16>}, {pipeline_mode = #tpu.pipeline_mode<synchronous>, transform_indices = @transform_2, window_bounds = array<i64: 16, 32>}, {pipeline_mode = #tpu.pipeline_mode<synchronous>, transform_indices = @transform_3, window_bounds = array<i64: 1, 32>}, {transform_indices = @transform_4, window_bounds = array<i64: 128, 32>}]} {
    %c0 = arith.constant 0 : index
    %c0_0 = arith.constant 0 : index
    %0 = vector.load %arg2[%c0, %c0_0] : memref<512x16xbf16, #tpu.memory_space<vmem>>, vector<512x16xbf16>
    %c0_1 = arith.constant 0 : index
    %c0_2 = arith.constant 0 : index
    %1 = vector.load %arg3[%c0_1, %c0_2] : memref<16x32xbf16, #tpu.memory_space<vmem>>, vector<16x32xbf16>
    %cst = arith.constant dense<0.000000e+00> : vector<512x32xf32>
    %2 = tpu.matmul %0, %1, %cst {dimension_numbers = #tpu.dot_dimension_numbers<[1], [0], [0], [1], [0, 0, 1, 1], [], []>} : vector<512x16xbf16>, vector<16x32xbf16>, vector<512x32xf32> -> vector<512x32xf32>
    %3 = arith.truncf %2 : vector<512x32xf32> to vector<512x32xbf16>
    %c0_3 = arith.constant 0 : index
    %c0_4 = arith.constant 0 : index
    %4 = vector.load %arg1[%c0_3, %c0_4] : memref<128x512xbf16, #tpu.memory_space<vmem>>, vector<128x512xbf16>
    %cst_5 = arith.constant dense<0.000000e+00> : vector<128x32xf32>
    %5 = tpu.matmul %4, %3, %cst_5 {dimension_numbers = #tpu.dot_dimension_numbers<[1], [0], [0], [1], [0, 0, 1, 1], [], []>} : vector<128x512xbf16>, vector<512x32xbf16>, vector<128x32xf32> -> vector<128x32xf32>
    %c0_6 = arith.constant 0 : index
    %c0_7 = arith.constant 0 : index
    %6 = vector.load %arg4[%c0_6, %c0_7] : memref<1x32xf32, #tpu.memory_space<vmem>>, vector<1x32xf32>
    %7 = vector.broadcast %6 : vector<1x32xf32> to vector<128x32xf32>
    %8 = arith.addf %5, %7 : vector<128x32xf32>
    %cst_8 = arith.constant 0.000000e+00 : f32
    %9 = vector.broadcast %cst_8 : f32 to vector<128x32xf32>
    %10 = arith.maximumf %8, %9 : vector<128x32xf32>
    %11 = arith.truncf %10 : vector<128x32xf32> to vector<128x32xbf16>
    %c0_9 = arith.constant 0 : index
    %c0_10 = arith.constant 0 : index
    %12 = vector.load %arg5[%c0_9, %c0_10] : memref<128x32xbf16, #tpu.memory_space<vmem>>, vector<128x32xbf16>
    tpu.vector_store %arg5[%c0_9, %c0_10], %11 {strides = array<i32>} : memref<128x32xbf16, #tpu.memory_space<vmem>>, vector<128x32xbf16>,
    return
  }
  func.func @transform_0(%arg0: i32) -> (i32, i32) {
    %c0_i32 = arith.constant 0 : i32
    %c0_i32_0 = arith.constant 0 : i32
    return %arg0, %c0_i32 : i32, i32
  }
  func.func @transform_1(%arg0: i32) -> (i32, i32) {
    %c0_i32 = arith.constant 0 : i32
    %c0_i32_0 = arith.constant 0 : i32
    %c0_i32_1 = arith.constant 0 : i32
    return %c0_i32, %c0_i32_0 : i32, i32
  }
  func.func @transform_2(%arg0: i32) -> (i32, i32) {
    %c0_i32 = arith.constant 0 : i32
    %c0_i32_0 = arith.constant 0 : i32
    %c0_i32_1 = arith.constant 0 : i32
    return %c0_i32, %c0_i32_0 : i32, i32
  }
  func.func @transform_3(%arg0: i32) -> (i32, i32) {
    %c0_i32 = arith.constant 0 : i32
    %c0_i32_0 = arith.constant 0 : i32
    %c0_i32_1 = arith.constant 0 : i32
    return %c0_i32, %c0_i32_0 : i32, i32
  }
  func.func @transform_4(%arg0: i32) -> (i32, i32) {
    %c0_i32 = arith.constant 0 : i32
    %c0_i32_0 = arith.constant 0 : i32
    return %arg0, %c0_i32 : i32, i32
  }
}

</mosaic_0001>

<bundles_post_ra>
// kernel: tpu_custom_call.1
= control target key start
LH: loop header
LB: loop body
LE: loop exit
PB: predicated region body
PF: predicated region fallthrough
CT: control target
= control target key end

     0   :  { %9 = vsyncpa [#allocation3], 0  ;;  %s2494_s0 = inlined_call_operand.hbm [shape: bf16[512,512], index: 0, kind: input, shape index: {}]   ;;  %s2495_s1 = inlined_call_operand.vmem [shape: bf16[512,16], index: 1, kind: input, shape index: {}]   ;;  %s2496_s2 = inlined_call_operand.vmem [shape: bf16[16,32], index: 2, kind: input, shape index: {}]   ;;  %s2497_s3 = inlined_call_operand.vmem [shape: f32[1,32], index: 3, kind: input, shape index: {}]   ;;  %s2498_s4 = inlined_call_operand.vmem [shape: bf16[512,32], index: 4, kind: output, shape index: {}]  }
   0x1   :  { %11 = vsyncpa [#allocation3 + $0x1], 0  ;;  %s2032_s15 = smov 0   ;;  %s2034_s16 = smov 0  }
   0x2   :  { %s2036_s17 = smov 0   ;;  %s2038_s18 = smov 0  }
   0x3 LB: > { %s1429_s19 = sadd.s32 4294967295, %s2002_s18   ;;  %s2052_s20 = sadd.s32 1, %s2002_s18   ;;  %s2002_s18 = sphi %s2038_s18, %s2507_s18   ;;  %s1998_s17 = sphi %s2036_s17, %s2506_s17   ;;  %s1994_s16 = sphi %s2034_s16, %s2505_s16   ;;  %s1990_s15 = sphi %s2032_s15, %s2504_s15  }
   0x4   : > { %s21_s21 = ssub.s32 %s2002_s18, %s2052_s20  ;;  %s24_s22 = sadd.s32 1, %s1998_s17 }
   0x5   : > { %p22_p0 = scmp.eq.s32.totalorder %s21_s21, 0  ;;  %p31_p1 = scmp.ne.s32.totalorder %s1998_s17, %s1994_s16 }
   0x6   : > { %p32_p2 = scmp.eq.s32.totalorder %s2002_s18, 0  ;;  %p37_p3 = scmp.ne.s32.totalorder %s1994_s16, %s1990_s15 }
   0x7   : > { %s2062_s23 = scalar_select %p22_p0, %s1998_s17, %s24_s22  }
   0x8   : > { %p33_p4 = por %p32_p2, %p31_p1  ;;  %p38_p5 = scmp.eq.s32.totalorder %s1429_s19, 0 }
   0x9   : > { %p1824_p6 = scmp.lt.s32.totalorder %s2002_s18, 4  ;;  %s159_s25 = sand.u32 1, %s1998_s17  }
   0xa   : > { %p2067_p7 = por %p38_p5, %p37_p3  ;;  %s1433_s26 = sshll.u32 %s159_s25, 8 }
   0xb   : > { %s1558_s27 = sshll.u32 %s2002_s18, 12  ;;  %s163_s5 = scalar_lea.vmem [#allocation2], %s1433_s26 }
   0xc   : > { %s2500_s24 = scalar_select %p2067_p7, 1, 0 }
   0xd   : > { %s2076_s30 = scalar_lea.hbm %s2494_s0, %s1558_s27  ;;  %s171_s6 = sshll.u32 %s163_s5, 4  ;;  %s2078_s6 = int_to_ptr.vmem [resolvable:$true] %s171_s6 }
   0xe   : > { %p2080_p8 = pnand %p1824_p6, %p33_p4  ;;  %s2085_s8 = scalar_lea.sflag [#allocation3], %s159_s25 }
   0xf   : > { %s1940_s9 = scalar_lea.hbm %s2076_s30, 4096  ;;  %s1945_s12 = scalar_lea.hbm %s2494_s0, 16384 }
  0x10   : > { %p1941_p10 = scmp.ne.s32.totalorder %s2076_s30, %s1940_s9  ;;  %p1942_p11 = pneg %p2080_p8 }
  0x11   : > { %p1946_p0 = scmp.lt.s32.totalorder %s2076_s30, %s2494_s0  ;;  %p1947_p1 = scmp.lt.s32.totalorder %s1945_s12, %s1940_s9 }
  0x12   : > { %p1943_p12 = pnand %p1942_p11, %p1941_p10 }
  0x13   : > { %p1948_p2 = por %p1947_p1, %p1946_p0 }
  0x14   : > { %p1944_p13 = pneg %p1943_p12 }
  0x16   : > { %p1949_p3 = pnand %p1948_p2, %p1944_p13 }
  0x18   : > { %1952 = shalt.err (!%p1949_p3)
}
  0x19   : > { %s1953_s15 = scalar_lea.vmem %s2078_s6, 4096  ;;  %s2004_s21 = smov [#allocation2]  }
  0x1a   : > { %p1954_p4 = scmp.ne.s32.totalorder %s2078_s6, %s1953_s15  ;;  %s1958_s22 = sshll.u32 %s2004_s21, 4  ;;  %s1959_s22 = int_to_ptr.vmem [resolvable:$false] %s1958_s22 }
  0x1b   : > { %s1960_s25 = scalar_lea.vmem %s1959_s22, 8192  ;;  %p1961_p10 = scmp.lt.s32.totalorder %s2078_s6, %s1959_s22 }
  0x1c   : > { %p1956_p5 = pnand %p1954_p4, %p1942_p11  ;;  %p1962_p12 = scmp.lt.s32.totalorder %s1960_s25, %s1953_s15 }
  0x1e   : > { %p1957_p6 = pneg %p1956_p5  ;;  %p1963_p9 = por %p1962_p12, %p1961_p10 }
  0x20   : > { %p1964_p7 = pnand %p1963_p9, %p1957_p6 }
  0x22   : > { %1967 = shalt.err (!%p1964_p7)
}
  0x23   : > { %s2005_s26 = smov 256   ;;  %s2006_s27 = smov 16  }
  0x24   : > { %1823 = dma.hbm_to_vmem [thread:$0]  (!%p2080_p8), %s2076_s30, 4096, %s2078_s6, %s2085_s8, %s2005_s26, %s2005_s26, %s2006_s27  }
  0x25   : > { %p179_p11 = scmp.lt.s32.totalorder %s2002_s18, 5  ;;  %p2502_p13 = scmp.ge.s32.totalorder %s2002_s18, 1 }
  0x27   : > { %p180_p0 = pnand %p2502_p13, %p179_p11 }
  0x28   : > { %s185_s28 = sand.u32 (!%p180_p0), 1, %s1994_s16   ;;  %p2503_p7 = scmp.ne.s32.totalorder (!%p180_p0), %s2500_s24, 0 }
  0x29   : > { %183 = sbr.rel (%p180_p0) target bundleno = 667 (0x29b), region = 36  ;;  %s1438_s29 = sshll.u32 (!%p180_p0), %s185_s28, 8 }
  0x2a   : > { %s186_s5 = scalar_lea.sflag (!%p180_p0), [#allocation3], %s185_s28  ;;  %s2110_s9 = scalar_lea.vmem (!%p180_p0), [#allocation2], %s1438_s29 }
  0x2e   : > { %1985 = dma.done.wait (%p2503_p7), %s186_s5, 4096  }
  0x2f   : > { %1987 = vsyncadd (%p2503_p7), %s186_s5, 4294963200  ;;  %v1859_v0 = vld [vmem:[%s2496_s2] sm:$0xff]   ;;  %vm454_vm0 = vcmask 130048   ;;  %v1861_v2 = vld [vmem:[%s2495_s1 + $0x8] sm:$0xff]   ;;  %vm1345_vm1 = vcmask 257024  }
  0x30   : > { %v1860_v1 = vld [vmem:[%s2495_s1] sm:$0xff]   ;;  %1736 = vmatprep.subr.bf16.mxu0 %v1859_v0  ;;  %v1862_v3 = vld [vmem:[%s2495_s1 + $0x10] sm:$0xff]   ;;  %v1863_v4 = vld [vmem:[%s2495_s1 + $0x18] sm:$0xff]  }
  0x31   : > { %1737 = vmatpush3.bf16.msra.mxu0 %v1859_v0  ;;  %1738 = vmatprep.mubr.msk.bf16.mxu0 %vm454_vm0, %v1860_v1  ;;  %v1864_v5 = vld [vmem:[%s2495_s1 + $0x20] sm:$0xff]   ;;  %v1865_v6 = vld [vmem:[%s2495_s1 + $0x28] sm:$0xff]   ;;  %v1866_v7 = vld [vmem:[%s2495_s1 + $0x30] sm:$0xff]  }
  0x32   : > { %v1867_v8 = vld [vmem:[%s2495_s1 + $0x38] sm:$0xff]   ;;  %v1868_v9 = vld [vmem:[%s2495_s1 + $0x40] sm:$0xff]   ;;  %v1869_v10 = vld [vmem:[%s2495_s1 + $0x48] sm:$0xff]  }
  0x33   : > { %v1870_v11 = vld [vmem:[%s2495_s1 + $0x50] sm:$0xff]   ;;  %v1871_v12 = vld [vmem:[%s2495_s1 + $0x58] sm:$0xff]   ;;  %v1872_v13 = vld [vmem:[%s2495_s1 + $0x60] sm:$0xff]  }
  0x34   : > { %1739 = vmatmul.mubr.msk.bf16.vlgmr.msra.gmra.mxu0 %vm454_vm0, %v1861_v2  ;;  %v1873_v14 = vld [vmem:[%s2495_s1 + $0x68] sm:$0xff]   ;;  %v1874_v15 = vld [vmem:[%s2495_s1 + $0x70] sm:$0xff]   ;;  %v1875_v16 = vld [vmem:[%s2495_s1 + $0x78] sm:$0xff]  }
  0x35   : > { %1742 = vmatprep.mubr.msk.bf16.mxu0 %vm454_vm0, %v1862_v3  ;;  %v1876_v17 = vld [vmem:[%s2495_s1 + $0x80] sm:$0xff]   ;;  %v1877_v18 = vld [vmem:[%s2495_s1 + $0x88] sm:$0xff]   ;;  %v1878_v19 = vld [vmem:[%s2495_s1 + $0x90] sm:$0xff]  }
  0x36   : > { %v1879_v20 = vld [vmem:[%s2495_s1 + $0x98] sm:$0xff]   ;;  %v1880_v21 = vld [vmem:[%s2495_s1 + $0xa0] sm:$0xff]   ;;  %v1881_v22 = vld [vmem:[%s2495_s1 + $0xa8] sm:$0xff]  }
  0x37   : > { %v1882_v23 = vld [vmem:[%s2495_s1 + $0xb0] sm:$0xff]   ;;  %v1883_v24 = vld [vmem:[%s2495_s1 + $0xb8] sm:$0xff]   ;;  %v1884_v25 = vld [vmem:[%s2495_s1 + $0xc0] sm:$0xff]  }
  0x38   : > { %v1885_v26 = vld [vmem:[%s2495_s1 + $0xc8] sm:$0xff]   ;;  %v1886_v27 = vld [vmem:[%s2495_s1 + $0xd0] sm:$0xff]   ;;  %v1887_v28 = vld [vmem:[%s2495_s1 + $0xd8] sm:$0xff]  }
  0x39   : > { %v1888_v29 = vld [vmem:[%s2495_s1 + $0xe0] sm:$0xff]   ;;  %v1889_v30 = vld [vmem:[%s2495_s1 + $0xe8] sm:$0xff]   ;;  %v1890_v31 = vld [vmem:[%s2495_s1 + $0xf0] sm:$0xff]  }
  0x3a   : > { %v1891_v32 = vld [vmem:[%s2495_s1 + $0xf8] sm:$0xff]   ;;  %v1894_v33 = vld [vmem:[%s2110_s9 + $0x24] ss:$16 sps:$4 sm:$0xff]  }
  0x3b   : > { %1111 = vmatprep.mubr.bf16.mxu1 %v1894_v33  ;;  %v1923_v52 = vld [vmem:[%s2110_s9 + $0x4] ss:$16 sps:$4 sm:$0xff]  }
  0x3c   : > { %1743 = vmatmul.mubr.msk.bf16.gmra.mxu0 %vm454_vm0, %v1863_v4 }
  0x3d   : > { %1746 = vmatprep.mubr.msk.bf16.mxu0 %vm454_vm0, %v1864_v5 }
  0x44   : > { %1747 = vmatmul.mubr.msk.bf16.gmra.mxu0 %vm454_vm0, %v1865_v6 }
  0x45   : > { %1750 = vmatprep.mubr.msk.bf16.mxu0 %vm454_vm0, %v1866_v7 }
  0x4c   : > { %1751 = vmatmul.mubr.msk.bf16.gmra.mxu0 %vm454_vm0, %v1867_v8 }
  0x4d   : > { %1754 = vmatprep.mubr.msk.bf16.mxu0 %vm454_vm0, %v1868_v9 }
  0x54   : > { %1755 = vmatmul.mubr.msk.bf16.gmra.mxu0 %vm454_vm0, %v1869_v10 }
  0x55   : > { %1758 = vmatprep.mubr.msk.bf16.mxu0 %vm454_vm0, %v1870_v11 }
  0x5c   : > { %1759 = vmatmul.mubr.msk.bf16.gmra.mxu0 %vm454_vm0, %v1871_v12 }
  0x5d   : > { %1762 = vmatprep.mubr.msk.bf16.mxu0 %vm454_vm0, %v1872_v13 }
  0x64   : > { %1763 = vmatmul.mubr.msk.bf16.gmra.mxu0 %vm454_vm0, %v1873_v14 }
  0x65   : > { %1766 = vmatprep.mubr.msk.bf16.mxu0 %vm454_vm0, %v1874_v15 }
  0x6c   : > { %1767 = vmatmul.mubr.msk.bf16.gmra.mxu0 %vm454_vm0, %v1875_v16 }
  0x6d   : > { %1770 = vmatprep.mubr.msk.bf16.mxu0 %vm454_vm0, %v1876_v17 }
  0x74   : > { %1771 = vmatmul.mubr.msk.bf16.gmra.mxu0 %vm454_vm0, %v1877_v18 }
  0x75   : > { %1774 = vmatprep.mubr.msk.bf16.mxu0 %vm454_vm0, %v1878_v19 }
  0x7c   : > { %1775 = vmatmul.mubr.msk.bf16.gmra.mxu0 %vm454_vm0, %v1879_v20 }
  0x7d   : > { %1778 = vmatprep.mubr.msk.bf16.mxu0 %vm454_vm0, %v1880_v21 }
  0x84   : > { %1779 = vmatmul.mubr.msk.bf16.gmra.mxu0 %vm454_vm0, %v1881_v22 }
  0x85   : > { %1782 = vmatprep.mubr.msk.bf16.mxu0 %vm454_vm0, %v1882_v23 }
  0x8c   : > { %1783 = vmatmul.mubr.msk.bf16.gmra.mxu0 %vm454_vm0, %v1883_v24 }
  0x8d   : > { %1786 = vmatprep.mubr.msk.bf16.mxu0 %vm454_vm0, %v1884_v25 }
  0x94   : > { %1787 = vmatmul.mubr.msk.bf16.gmra.mxu0 %vm454_vm0, %v1885_v26 }
  0x95   : > { %1790 = vmatprep.mubr.msk.bf16.mxu0 %vm454_vm0, %v1886_v27 }
  0x9c   : > { %1791 = vmatmul.mubr.msk.bf16.gmra.mxu0 %vm454_vm0, %v1887_v28 }
  0x9d   : > { %1794 = vmatprep.mubr.msk.bf16.mxu0 %vm454_vm0, %v1888_v29 }
  0xa4   : > { %1795 = vmatmul.mubr.msk.bf16.gmra.mxu0 %vm454_vm0, %v1889_v30 }
  0xa5   : > { %1798 = vmatprep.mubr.msk.bf16.mxu0 %vm454_vm0, %v1890_v31 }
  0xac   : > { %1799 = vmatmul.mubr.msk.bf16.gmra.mxu0 %vm454_vm0, %v1891_v32 }
  0xad   : > { %1103 = vmatprep.mubr.bf16.mxu0 %v1923_v52  ;;  %v1901_v52 = vld [vmem:[%s2110_s9 + $0x84] ss:$16 sps:$4 sm:$0xff]  }
  0xf4   : > { %v1740_v34 = vpop.f32.mrf.mxu0 }
  0xf6   : > { %v585_v35 = vpop.f32.mrf.mxu0 }
  0xf8   : > { %v1741_v36 = vpop.f32.mrf.mxu0 }
  0xf9   : > { %v2248_v37 = vpack.c.bf16 %v1741_v36, %v1740_v34 }
  0xfa   : > { %v588_v38 = vpop.f32.mrf.mxu0 }
  0xfb   : > { %v2250_v39 = vpack.c.bf16 %v588_v38, %v585_v35  ;;  %v1892_v38 = vld [vmem:[%s2110_s9 + $0x20] ss:$16 sps:$4 sm:$0xff]  }
  0xfc   : > { %v1744_v40 = vpop.f32.mrf.mxu0 }
  0xfe   : > { %v601_v41 = vpop.f32.mrf.mxu0 }
 0x100   : > { %v1745_v42 = vpop.f32.mrf.mxu0 }
 0x101   : > { %v2252_v43 = vpack.c.bf16 %v1745_v42, %v1744_v40  ;;  %v1921_v40 = vld [vmem:[%s2110_s9] ss:$16 sps:$4 sm:$0xff]   ;;  %v1895_v42 = vld [vmem:[%s2110_s9 + $0x44] ss:$16 sps:$4 sm:$0xff]  }
 0x102   : > { %v604_v44 = vpop.f32.mrf.mxu0 }
 0x103   : > { %v2254_v45 = vpack.c.bf16 %v604_v44, %v601_v41 }
 0x104   : > { %v1748_v46 = vpop.f32.mrf.mxu0 }
 0x106   : > { %v617_v47 = vpop.f32.mrf.mxu0 }
 0x108   : > { %v1749_v48 = vpop.f32.mrf.mxu0 }
 0x109   : > { %v845_v16 = vpack.c.bf16 %v1749_v48, %v1748_v46 }
 0x10a   : > { %v620_v49 = vpop.f32.mrf.mxu0 }
 0x10b   : > { %v844_v21 = vpack.c.bf16 %v620_v49, %v617_v47  ;;  %v1898_v47 = vld [vmem:[%s2110_s9 + $0x64] ss:$16 sps:$4 sm:$0xff]  }
 0x10c   : > { %v1752_v50 = vpop.f32.mrf.mxu0 }
 0x10e   : > { %v633_v51 = vpop.f32.mrf.mxu0 }
 0x110   : > { %v1753_v53 = vpop.f32.mrf.mxu0 }
 0x111   : > { %v847_v7 = vpack.c.bf16 %v1753_v53, %v1752_v50  ;;  %v1900_v50 = vld [vmem:[%s2110_s9 + $0x60] ss:$16 sps:$4 sm:$0xff]  }
 0x112   : > { %v636_v54 = vpop.f32.mrf.mxu0 }
 0x113   : > { %v846_v11 = vpack.c.bf16 %v636_v54, %v633_v51 }
 0x114   : > { %v1756_v55 = vpop.f32.mrf.mxu0 }
 0x116   : > { %v2257_v56 = vpop.f32.mrf.mxu0 }
 0x118   : > { %v1757_v57 = vpop.f32.mrf.mxu0 }
 0x119   : > { %v849_v31 = vpack.c.bf16 %v1757_v57, %v1756_v55 }
 0x11a   : > { %v2259_v58 = vpop.f32.mrf.mxu0 }
 0x11b   : > { %v848_v34 = vpack.c.bf16 %v2259_v58, %v2257_v56  ;;  %v1903_v56 = vld [vmem:[%s2110_s9 + $0x80] ss:$16 sps:$4 sm:$0xff]   ;;  %v1904_v58 = vld [vmem:[%s2110_s9 + $0xa4] ss:$16 sps:$4 sm:$0xff]  }
 0x11c   : > { %v1760_v59 = vpop.f32.mrf.mxu0 }
 0x11e   : > { %v665_v60 = vpop.f32.mrf.mxu0 }
 0x120   : > { %v1761_v61 = vpop.f32.mrf.mxu0 }
 0x121   : > { %v851_v23 = vpack.c.bf16 %v1761_v61, %v1760_v59 }
 0x122   : > { %v668_v62 = vpop.f32.mrf.mxu0 }
 0x123   : > { %v850_v27 = vpack.c.bf16 %v668_v62, %v665_v60  ;;  %v1906_v62 = vld [vmem:[%s2110_s9 + $0xa0] ss:$16 sps:$4 sm:$0xff]  }
 0x124   : > { %v1764_v63 = vpop.f32.mrf.mxu0 }
 0x126   : > { %v681_v0 = vpop.f32.mrf.mxu0 }
 0x128   : > { %v1765_v1 = vpop.f32.mrf.mxu0 }
 0x129   : > { %v853_v13 = vpack.c.bf16 %v1765_v1, %v1764_v63 }
 0x12a   : > { %v684_v2 = vpop.f32.mrf.mxu0 }
 0x12b   : > { %v852_v18 = vpack.c.bf16 %v684_v2, %v681_v0  ;;  %v1907_v0 = vld [vmem:[%s2110_s9 + $0xc4] ss:$16 sps:$4 sm:$0xff]  }
 0x12c   : > { %v1768_v3 = vpop.f32.mrf.mxu0 }
 0x12e   : > { %v697_v4 = vpop.f32.mrf.mxu0 }
 0x130   : > { %v1769_v5 = vpop.f32.mrf.mxu0 }
 0x131   : > { %v855_v6 = vpack.c.bf16 %v1769_v5, %v1768_v3 }
 0x132   : > { %v700_v8 = vpop.f32.mrf.mxu0 }
 0x133   : > { %v854_v9 = vpack.c.bf16 %v700_v8, %v697_v4  ;;  %1608 = vmatprep.subr.bf16.mxu0 %v855_v6  ;;  %1802 = vmatprep.subr.bf16.mxu1 %v855_v6  ;;  %v1910_v8 = vld [vmem:[%s2110_s9 + $0xe4] ss:$16 sps:$4 sm:$0xff]  }
 0x134   : > { %v2261_v10 = vpop.f32.mrf.mxu0  ;;  %1609 = vmatpush3.bf16.msra.mxu0 %v847_v7  ;;  %1810 = vmatpush3.bf16.msra.mxu1 %v847_v7  ;;  %v1909_v7 = vld [vmem:[%s2110_s9 + $0xc0] ss:$16 sps:$4 sm:$0xff]  }
 0x135   : > { %1610 = vmatprep.subr.bf16.mxu0 %v854_v9  ;;  %1803 = vmatprep.subr.bf16.mxu1 %v854_v9 }
 0x136   : > { %v2263_v12 = vpop.f32.mrf.mxu0 }
 0x138   : > { %v2265_v14 = vpop.f32.mrf.mxu0  ;;  %1611 = vmatpush3.bf16.msra.mxu0 %v846_v11  ;;  %1811 = vmatpush3.bf16.msra.mxu1 %v846_v11 }
 0x139   : > { %v857_v15 = vpack.c.bf16 %v2265_v14, %v2261_v10  ;;  %1612 = vmatprep.subr.bf16.mxu0 %v853_v13  ;;  %1804 = vmatprep.subr.bf16.mxu1 %v853_v13  ;;  %v1924_v10 = vld [vmem:[%s2110_s9 + $0x48] ss:$16 sps:$4 sm:$0xff]   ;;  %v1925_v14 = vld [vmem:[%s2110_s9 + $0x6c] ss:$16 sps:$4 sm:$0xff]  }
 0x13a   : > { %v2269_v17 = vpop.f32.mrf.mxu0 }
 0x13b   : > { %v856_v19 = vpack.c.bf16 %v2269_v17, %v2263_v12  ;;  %v1928_v12 = vld [vmem:[%s2110_s9 + $0x8c] ss:$16 sps:$4 sm:$0xff]   ;;  %v1930_v17 = vld [vmem:[%s2110_s9 + $0x88] ss:$16 sps:$4 sm:$0xff]  }
 0x13c   : > { %v2273_v20 = vpop.f32.mrf.mxu0  ;;  %1613 = vmatpush3.bf16.msra.mxu0 %v845_v16  ;;  %1812 = vmatpush3.bf16.msra.mxu1 %v845_v16 }
 0x13d   : > { %1614 = vmatprep.subr.bf16.mxu0 %v852_v18  ;;  %1805 = vmatprep.subr.bf16.mxu1 %v852_v18  ;;  %v1912_v18 = vld [vmem:[%s2110_s9 + $0xe0] ss:$16 sps:$4 sm:$0xff]  }
 0x13e   : > { %v2275_v22 = vpop.f32.mrf.mxu0 }
 0x140   : > { %v2277_v24 = vpop.f32.mrf.mxu0  ;;  %1615 = vmatpush3.bf16.msra.mxu0 %v844_v21  ;;  %1813 = vmatpush3.bf16.msra.mxu1 %v844_v21  ;;  %v1915_v21 = vld [vmem:[%s2110_s9 + $0xc] ss:$16 sps:$4 sm:$0xff]  }
 0x141   : > { %v859_v25 = vpack.c.bf16 %v2277_v24, %v2273_v20  ;;  %1616 = vmatprep.subr.bf16.mxu0 %v851_v23  ;;  %1806 = vmatprep.subr.bf16.mxu1 %v851_v23  ;;  %v1913_v20 = vld [vmem:[%s2110_s9 + $0x8] ss:$16 sps:$4 sm:$0xff]   ;;  %v1916_v24 = vld [vmem:[%s2110_s9 + $0x2c] ss:$16 sps:$4 sm:$0xff]  }
 0x142   : > { %v2281_v26 = vpop.f32.mrf.mxu0 }
 0x143   : > { %v858_v28 = vpack.c.bf16 %v2281_v26, %v2275_v22  ;;  %v1918_v22 = vld [vmem:[%s2110_s9 + $0x28] ss:$16 sps:$4 sm:$0xff]  }
 0x144   : > { %v2285_v29 = vpop.f32.mrf.mxu0  ;;  %1617 = vmatpush3.bf16.msra.mxu0 %v2252_v43  ;;  %1814 = vmatpush3.bf16.msra.mxu1 %v2252_v43  ;;  %v1933_v26 = vld [vmem:[%s2110_s9 + $0xa8] ss:$16 sps:$4 sm:$0xff]  }
 0x145   : > { %1618 = vmatprep.subr.bf16.mxu0 %v850_v27  ;;  %1807 = vmatprep.subr.bf16.mxu1 %v850_v27 }
 0x146   : > { %v2289_v30 = vpop.f32.mrf.mxu0 }
 0x148   : > { %v2291_v32 = vpop.f32.mrf.mxu0  ;;  %1619 = vmatpush3.bf16.msra.mxu0 %v2254_v45  ;;  %1815 = vmatpush3.bf16.msra.mxu1 %v2254_v45  ;;  %v1897_v45 = vld [vmem:[%s2110_s9 + $0x40] ss:$16 sps:$4 sm:$0xff]  }
 0x149   : > { %1620 = vmatprep.subr.bf16.mxu0 %v849_v31  ;;  %1808 = vmatprep.subr.bf16.mxu1 %v849_v31  ;;  %v861_v9 = vpack.c.bf16 %v2291_v32, %v2285_v29  ;;  %v1937_v31 = vld [vmem:[%s2110_s9 + $0xec] ss:$16 sps:$4 sm:$0xff]   ;;  %v1939_v32 = vld [vmem:[%s2110_s9 + $0xe8] ss:$16 sps:$4 sm:$0xff]  }
 0x14a   : > { %v2295_v33 = vpop.f32.mrf.mxu0 }
 0x14b   : > { %v860_v13 = vpack.c.bf16 %v2295_v33, %v2289_v30  ;;  %v1936_v30 = vld [vmem:[%s2110_s9 + $0xc8] ss:$16 sps:$4 sm:$0xff]  }
 0x14c   : > { %v1784_v35 = vpop.f32.mrf.mxu0  ;;  %1621 = vmatpush3.bf16.msra.mxu0 %v2248_v37  ;;  %1816 = vmatpush3.bf16.msra.mxu1 %v2248_v37 }
 0x14d   : > { %1622 = vmatprep.subr.bf16.mxu0 %v848_v34  ;;  %1809 = vmatprep.subr.bf16.mxu1 %v848_v34 }
 0x14e   : > { %v761_v36 = vpop.f32.mrf.mxu0 }
 0x150   : > { %v1785_v41 = vpop.f32.mrf.mxu0  ;;  %1623 = vmatpush3.bf16.msra.mxu0 %v2250_v39  ;;  %1817 = vmatpush3.bf16.msra.mxu1 %v2250_v39 }
 0x151   : > { %v863_v2 = vpack.c.bf16 %v1785_v41, %v1784_v35 }
 0x152   : > { %v764_v43 = vpop.f32.mrf.mxu0 }
 0x153   : > { %1112 = vmatmul.mubr.bf16.vlgmr.msra.gmra.mxu1 %v1892_v38  ;;  %1104 = vmatmul.mubr.bf16.vlgmr.msra.gmra.mxu0 %v1921_v40  ;;  %v862_v5 = vpack.c.bf16 %v764_v43, %v761_v36 }
 0x154   : > { %v2306_v44 = vpop.f32.mrf.mxu0  ;;  %1119 = vmatprep.mubr.bf16.mxu1 %v1895_v42 }
 0x156   : > { %v2308_v37 = vpop.f32.mrf.mxu0 }
 0x158   : > { %v1789_v46 = vpop.f32.mrf.mxu0 }
 0x159   : > { %v865_v27 = vpack.c.bf16 %v1789_v46, %v2306_v44 }
 0x15a   : > { %v780_v48 = vpop.f32.mrf.mxu0 }
 0x15b   : > { %1120 = vmatmul.mubr.bf16.gmra.mxu1 %v1897_v45  ;;  %v864_v29 = vpack.c.bf16 %v780_v48, %v2308_v37 }
 0x15c   : > { %v1792_v49 = vpop.f32.mrf.mxu0  ;;  %1127 = vmatprep.mubr.bf16.mxu1 %v1898_v47 }
 0x15e   : > { %v793_v39 = vpop.f32.mrf.mxu0 }
 0x160   : > { %v1793_v51 = vpop.f32.mrf.mxu0 }
 0x161   : > { %v867_v16 = vpack.c.bf16 %v1793_v51, %v1792_v49 }
 0x162   : > { %v796_v53 = vpop.f32.mrf.mxu0 }
 0x163   : > { %1128 = vmatmul.mubr.bf16.gmra.mxu1 %v1900_v50  ;;  %v866_v23 = vpack.c.bf16 %v796_v53, %v793_v39 }
 0x164   : > { %v1796_v54 = vpop.f32.mrf.mxu0  ;;  %1135 = vmatprep.mubr.bf16.mxu1 %v1901_v52 }
 0x166   : > { %v809_v55 = vpop.f32.mrf.mxu0 }
 0x168   : > { %v1797_v57 = vpop.f32.mrf.mxu0 }
 0x169   : > { %v869_v6 = vpack.c.bf16 %v1797_v57, %v1796_v54 }
 0x16a   : > { %v812_v59 = vpop.f32.mrf.mxu0 }
 0x16b   : > { %1136 = vmatmul.mubr.bf16.gmra.mxu1 %v1903_v56  ;;  %v868_v11 = vpack.c.bf16 %v812_v59, %v809_v55 }
 0x16c   : > { %v1800_v60 = vpop.f32.mrf.mxu0  ;;  %1143 = vmatprep.mubr.bf16.mxu1 %v1904_v58 }
 0x16e   : > { %v825_v61 = vpop.f32.mrf.mxu0 }
 0x170   : > { %v1801_v63 = vpop.f32.mrf.mxu0 }
 0x171   : > { %v871_v1 = vpack.c.bf16 %v1801_v63, %v1800_v60 }
 0x172   : > { %v828_v3 = vpop.f32.mrf.mxu0 }
 0x173   : > { %v870_v4 = vpack.c.bf16 %v828_v3, %v825_v61  ;;  %1672 = vmatprep.subr.bf16.mxu1 %v871_v1  ;;  %1144 = vmatmul.mubr.bf16.gmra.mxu1 %v1906_v62 }
 0x174   : > { %1673 = vmatpush3.bf16.msra.mxu1 %v863_v2  ;;  %1151 = vmatprep.mubr.bf16.mxu1 %v1907_v0  ;;  %v2404_v2 = vld [vmem:[%s2497_s3] ss:$0 sm:$0xff] }
 0x175   : > { %1674 = vmatprep.subr.bf16.mxu1 %v870_v4 }
 0x178   : > { %1675 = vmatpush3.bf16.msra.mxu1 %v862_v5 }
 0x179   : > { %1676 = vmatprep.subr.bf16.mxu1 %v869_v6 }
 0x17b   : > { %1152 = vmatmul.mubr.bf16.gmra.mxu1 %v1909_v7 }
 0x17c   : > { %1677 = vmatpush3.bf16.msra.mxu1 %v861_v9  ;;  %1159 = vmatprep.mubr.bf16.mxu1 %v1910_v8 }
 0x17d   : > { %1678 = vmatprep.subr.bf16.mxu1 %v868_v11 }
 0x180   : > { %1679 = vmatpush3.bf16.msra.mxu1 %v860_v13 }
 0x181   : > { %1680 = vmatprep.subr.bf16.mxu1 %v867_v16 }
 0x183   : > { %1160 = vmatmul.mubr.bf16.gmra.mxu1 %v1912_v18 }
 0x184   : > { %1681 = vmatpush3.bf16.msra.mxu1 %v859_v25  ;;  %1200 = vmatprep.mubr.bf16.mxu1 %v1915_v21  ;;  %v1919_v25 = vld [vmem:[%s2110_s9 + $0x4c] ss:$16 sps:$4 sm:$0xff]  }
 0x185   : > { %1682 = vmatprep.subr.bf16.mxu1 %v866_v23 }
 0x188   : > { %1683 = vmatpush3.bf16.msra.mxu1 %v858_v28  ;;  %v1934_v28 = vld [vmem:[%s2110_s9 + $0xcc] ss:$16 sps:$4 sm:$0xff]  }
 0x189   : > { %1684 = vmatprep.subr.bf16.mxu1 %v865_v27 }
 0x18c   : > { %1685 = vmatpush3.bf16.msra.mxu1 %v857_v15  ;;  %v1927_v15 = vld [vmem:[%s2110_s9 + $0x68] ss:$16 sps:$4 sm:$0xff]  }
 0x18d   : > { %1686 = vmatprep.subr.bf16.mxu1 %v864_v29 }
 0x190   : > { %1687 = vmatpush3.bf16.msra.mxu1 %v856_v19  ;;  %v1931_v19 = vld [vmem:[%s2110_s9 + $0xac] ss:$16 sps:$4 sm:$0xff]   ;;  %s1439_s9 = sshll.u32 %s1429_s19, 4 }
 0x191   : > { %p216_p8 = scmp.lt.s32.totalorder %s1439_s9, 63 }
 0x193   : > { %1201 = vmatmul.mubr.bf16.vlgmr.msra.gmra.mxu1 %v1913_v20  ;;  %s2509_s9 = smov (!%p216_p8, %s1439_s9), 63 }
 0x194   : > { %1208 = vmatprep.mubr.bf16.mxu1 %v1916_v24  ;;  %s1440_s18 = sshll.u32 %s2509_s9, 2 }
 0x195   : > { %s2411_s22 = scalar_lea.vmem %s2498_s4, %s1440_s18 }
 0x19b   : > { %1209 = vmatmul.mubr.bf16.gmra.mxu1 %v1918_v22 }
 0x19c   : > { %1216 = vmatprep.mubr.bf16.mxu1 %v1919_v25 }
 0x1a3   : > { %1217 = vmatmul.mubr.bf16.gmra.mxu1 %v1924_v10 }
 0x1a4   : > { %1224 = vmatprep.mubr.bf16.mxu1 %v1925_v14 }
 0x1ab   : > { %1225 = vmatmul.mubr.bf16.gmra.mxu1 %v1927_v15 }
 0x1ac   : > { %1232 = vmatprep.mubr.bf16.mxu1 %v1928_v12 }
 0x1b3   : > { %1233 = vmatmul.mubr.bf16.gmra.mxu1 %v1930_v17 }
 0x1b4   : > { %1240 = vmatprep.mubr.bf16.mxu1 %v1931_v19 }
 0x1bb   : > { %1241 = vmatmul.mubr.bf16.gmra.mxu1 %v1933_v26 }
 0x1bc   : > { %1248 = vmatprep.mubr.bf16.mxu1 %v1934_v28 }
 0x1c3   : > { %1249 = vmatmul.mubr.bf16.gmra.mxu1 %v1936_v30 }
 0x1c4   : > { %1256 = vmatprep.mubr.bf16.mxu1 %v1937_v31 }
 0x1cb   : > { %1257 = vmatmul.mubr.bf16.gmra.mxu1 %v1939_v32 }
 0x213   : > { %v1630_v33 = vpop.f32.mrf.mxu1  ;;  %v1624_v58 = vpop.f32.mrf.mxu0 }
 0x215   : > { %v1631_v34 = vpop.f32.mrf.mxu1  ;;  %v1625_v60 = vpop.f32.mrf.mxu0 }
 0x216   : > { %v1626_v63 = vadd.f32 %v1625_v60, %v1624_v58  ;;  %v1632_v16 = vadd.f32 %v1631_v34, %v1630_v33 }
 0x217   : > { %v1633_v35 = vpop.f32.mrf.mxu1  ;;  %v1627_v62 = vpop.f32.mrf.mxu0 }
 0x218   : > { %v1106_v4 = vadd.f32 %v1626_v63, %v2404_v2  ;;  %v1114_v24 = vadd.f32 %v1632_v16, %v2404_v2 }
 0x219   : > { %v1634_v36 = vpop.f32.mrf.mxu1  ;;  %v1628_v1 = vpop.f32.mrf.mxu0 }
 0x21a   : > { %v1629_v5 = vadd.f32 %v1628_v1, %v1627_v62  ;;  %v1635_v22 = vadd.f32 %v1634_v36, %v1633_v35 }
 0x21b   : > { %v1636_v38 = vpop.f32.mrf.mxu1 }
 0x21c   : > { %v1109_v11 = vadd.f32 %v1629_v5, %v2404_v2  ;;  %v1117_v19 = vadd.f32 %v1635_v22, %v2404_v2 }
 0x21d   : > { %v1637_v40 = vpop.f32.mrf.mxu1 }
 0x21e   : > { %v1638_v26 = vadd.f32 %v1637_v40, %v1636_v38 }
 0x21f   : > { %v2355_v41 = vpop.f32.mrf.mxu1 }
 0x220   : > { %v1122_v35 = vadd.f32 %v1638_v26, %v2404_v2 }
 0x221   : > { %v2357_v42 = vpop.f32.mrf.mxu1 }
 0x222   : > { %v1641_v36 = vadd.f32 %v2357_v42, %v2355_v41 }
 0x223   : > { %v2359_v43 = vpop.f32.mrf.mxu1 }
 0x224   : > { %v1125_v1 = vadd.f32 %v1641_v36, %v2404_v2 }
 0x225   : > { %v2361_v44 = vpop.f32.mrf.mxu1 }
 0x227   : > { %v2363_v37 = vpop.f32.mrf.mxu1 }
 0x229   : > { %v2365_v45 = vpop.f32.mrf.mxu1 }
 0x22b   : > { %v2367_v46 = vpop.f32.mrf.mxu1 }
 0x22d   : > { %v2369_v47 = vpop.f32.mrf.mxu1 }
 0x22f   : > { %v2371_v48 = vpop.f32.mrf.mxu1 }
 0x231   : > { %v2373_v49 = vpop.f32.mrf.mxu1 }
 0x233   : > { %v2375_v39 = vpop.f32.mrf.mxu1 }
 0x235   : > { %v2377_v50 = vpop.f32.mrf.mxu1 }
 0x237   : > { %v2379_v51 = vpop.f32.mrf.mxu1 }
 0x239   : > { %v2381_v52 = vpop.f32.mrf.mxu1 }
 0x23b   : > { %v2383_v53 = vpop.f32.mrf.mxu1 }
 0x23d   : > { %v2385_v54 = vpop.f32.mrf.mxu1 }
 0x23f   : > { %v2387_v55 = vpop.f32.mrf.mxu1 }
 0x241   : > { %v2389_v56 = vpop.f32.mrf.mxu1 }
 0x243   : > { %v2391_v57 = vpop.f32.mrf.mxu1 }
 0x245   : > { %v2393_v59 = vpop.f32.mrf.mxu1 }
 0x247   : > { %v2395_v61 = vpop.f32.mrf.mxu1 }
 0x249   : > { %v2399_v0 = vpop.f32.mrf.mxu1 }
 0x253   : > { %v1688_v3 = vpop.f32.mrf.mxu1 }
 0x255   : > { %v1689_v6 = vpop.f32.mrf.mxu1 }
 0x256   : > { %v1690_v7 = vadd.f32 %v1689_v6, %v1688_v3  ;;  %v1644_v3 = vadd.f32 %v2361_v44, %v2359_v43 }
 0x257   : > { %v1691_v8 = vpop.f32.mrf.mxu1 }
 0x258   : > { %v1203_v9 = vadd.f32 %v1690_v7, %v1106_v4 }
 0x259   : > { %v1692_v13 = vpop.f32.mrf.mxu1 }
 0x25a   : > { %v1693_v18 = vadd.f32 %v1692_v13, %v1691_v8  ;;  %v1265_v21 = vmax.f32 %v1203_v9, 0.0  ;;  %v1130_v8 = vadd.f32 %v1644_v3, %v2404_v2  ;;  %v1647_v9 = vadd.f32 %v2365_v45, %v2363_v37 }
 0x25b   : > { %v1694_v23 = vpop.f32.mrf.mxu1 }
 0x25c   : > { %v1559_v27 = vpack.c.bf16 %v1265_v21, %v1265_v21  ;;  %v1206_v29 = vadd.f32 %v1693_v18, %v1109_v11  ;;  %v1133_v21 = vadd.f32 %v1647_v9, %v2404_v2 }
 0x25d   : > { %v1695_v20 = vpop.f32.mrf.mxu1 }
 0x25e   : > { %v1696_v25 = vadd.f32 %v1695_v20, %v1694_v23  ;;  %1346 = vst.msk [vmem:[%s2411_s22] sm:$0xf] %vm1345_vm1, %v1559_v27  ;;  %v1266_v10 = vmax.f32 %v1206_v29, 0.0  ;;  %v1650_v23 = vadd.f32 %v2369_v47, %v2367_v46 }
 0x25f   : > { %v1697_v14 = vpop.f32.mrf.mxu1 }
 0x260   : > { %v1211_v15 = vadd.f32 %v1696_v25, %v1114_v24  ;;  %v1560_v12 = vpack.c.bf16 %v1266_v10, %v1266_v10  ;;  %v1138_v22 = vadd.f32 %v1650_v23, %v2404_v2  ;;  %v1653_v25 = vadd.f32 %v2373_v49, %v2371_v48 }
 0x261   : > { %v1698_v17 = vpop.f32.mrf.mxu1 }
 0x262   : > { %v1267_v28 = vmax.f32 %v1211_v15, 0.0  ;;  %v1699_v30 = vadd.f32 %v1698_v17, %v1697_v14  ;;  %1347 = vst.msk [vmem:[%s2411_s22 + $0x4] sm:$0xf] %vm1345_vm1, %v1560_v12  ;;  %v1141_v17 = vadd.f32 %v1653_v25, %v2404_v2 }
 0x263   : > { %v1700_v31 = vpop.f32.mrf.mxu1 }
 0x264   : > { %v1561_v32 = vpack.c.bf16 %v1267_v28, %v1267_v28  ;;  %v1214_v33 = vadd.f32 %v1699_v30, %v1117_v19  ;;  %v1656_v19 = vadd.f32 %v2377_v50, %v2375_v39 }
 0x265   : > { %v1701_v34 = vpop.f32.mrf.mxu1 }
 0x266   : > { %1348 = vst.msk [vmem:[%s2411_s22 + $0x8] sm:$0xf] %vm1345_vm1, %v1561_v32  ;;  %v1268_v58 = vmax.f32 %v1214_v33, 0.0  ;;  %v1702_v60 = vadd.f32 %v1701_v34, %v1700_v31  ;;  %v1146_v32 = vadd.f32 %v1656_v19, %v2404_v2  ;;  %v1659_v33 = vadd.f32 %v2381_v52, %v2379_v51 }
 0x267   : > { %v1703_v38 = vpop.f32.mrf.mxu1 }
 0x268   : > { %v1562_v40 = vpack.c.bf16 %v1268_v58, %v1268_v58  ;;  %v1219_v62 = vadd.f32 %v1702_v60, %v1122_v35  ;;  %v1149_v60 = vadd.f32 %v1659_v33, %v2404_v2 }
 0x269   : > { %v1704_v63 = vpop.f32.mrf.mxu1 }
 0x26a   : > { %1349 = vst.msk [vmem:[%s2411_s22 + $0xc] sm:$0xf] %vm1345_vm1, %v1562_v40  ;;  %v1269_v4 = vmax.f32 %v1219_v62, 0.0  ;;  %v1705_v5 = vadd.f32 %v1704_v63, %v1703_v38  ;;  %v1662_v38 = vadd.f32 %v2385_v54, %v2383_v53 }
 0x26b   : > { %v1706_v41 = vpop.f32.mrf.mxu1 }
 0x26c   : > { %v1563_v42 = vpack.c.bf16 %v1269_v4, %v1269_v4  ;;  %v1222_v6 = vadd.f32 %v1705_v5, %v1125_v1  ;;  %v1154_v3 = vadd.f32 %v1662_v38, %v2404_v2  ;;  %v1665_v4 = vadd.f32 %v2389_v56, %v2387_v55 }
 0x26d   : > { %v1707_v7 = vpop.f32.mrf.mxu1 }
 0x26e   : > { %1350 = vst.msk [vmem:[%s2411_s22 + $0x10] sm:$0xf] %vm1345_vm1, %v1563_v42  ;;  %v1270_v11 = vmax.f32 %v1222_v6, 0.0  ;;  %v1708_v13 = vadd.f32 %v1707_v7, %v1706_v41  ;;  %v1157_v7 = vadd.f32 %v1665_v4, %v2404_v2 }
 0x26f   : > { %v1709_v43 = vpop.f32.mrf.mxu1 }
 0x270   : > { %v1564_v44 = vpack.c.bf16 %v1270_v11, %v1270_v11  ;;  %v1227_v16 = vadd.f32 %v1708_v13, %v1130_v8  ;;  %v1668_v8 = vadd.f32 %v2393_v59, %v2391_v57 }
 0x271   : > { %v1710_v18 = vpop.f32.mrf.mxu1 }
 0x272   : > { %1351 = vst.msk [vmem:[%s2411_s22 + $0x14] sm:$0xf] %vm1345_vm1, %v1564_v44  ;;  %v1271_v27 = vmax.f32 %v1227_v16, 0.0  ;;  %v1711_v29 = vadd.f32 %v1710_v18, %v1709_v43  ;;  %v1162_v44 = vadd.f32 %v1668_v8, %v2404_v2  ;;  %v1671_v16 = vadd.f32 %v2399_v0, %v2395_v61 }
 0x273   : > { %v1712_v37 = vpop.f32.mrf.mxu1 }
 0x274   : > { %v1565_v45 = vpack.c.bf16 %v1271_v27, %v1271_v27  ;;  %v1230_v20 = vadd.f32 %v1711_v29, %v1133_v21  ;;  %v1165_v29 = vadd.f32 %v1671_v16, %v2404_v2 }
 0x275   : > { %v1713_v24 = vpop.f32.mrf.mxu1 }
 0x276   : > { %1352 = vst.msk [vmem:[%s2411_s22 + $0x18] sm:$0xf] %vm1345_vm1, %v1565_v45  ;;  %v1272_v10 = vmax.f32 %v1230_v20, 0.0  ;;  %v1714_v14 = vadd.f32 %v1713_v24, %v1712_v37 }
 0x277   : > { %v1715_v46 = vpop.f32.mrf.mxu1 }
 0x278   : > { %v1566_v47 = vpack.c.bf16 %v1272_v10, %v1272_v10  ;;  %v1235_v15 = vadd.f32 %v1714_v14, %v1138_v22 }
 0x279   : > { %v1716_v12 = vpop.f32.mrf.mxu1 }
 0x27a   : > { %1353 = vst.msk [vmem:[%s2411_s22 + $0x1c] sm:$0xf] %vm1345_vm1, %v1566_v47  ;;  %v1273_v26 = vmax.f32 %v1235_v15, 0.0  ;;  %v1717_v28 = vadd.f32 %v1716_v12, %v1715_v46 }
 0x27b   : > { %v1718_v48 = vpop.f32.mrf.mxu1 }
 0x27c   : > { %v1567_v49 = vpack.c.bf16 %v1273_v26, %v1273_v26  ;;  %v1238_v30 = vadd.f32 %v1717_v28, %v1141_v17 }
 0x27d   : > { %v1719_v31 = vpop.f32.mrf.mxu1 }
 0x27e   : > { %1354 = vst.msk [vmem:[%s2411_s22 + $0x20] sm:$0xf] %vm1345_vm1, %v1567_v49  ;;  %v1274_v34 = vmax.f32 %v1238_v30, 0.0  ;;  %v1720_v35 = vadd.f32 %v1719_v31, %v1718_v48 }
 0x27f   : > { %v1721_v39 = vpop.f32.mrf.mxu1 }
 0x280   : > { %v1568_v50 = vpack.c.bf16 %v1274_v34, %v1274_v34  ;;  %v1243_v36 = vadd.f32 %v1720_v35, %v1146_v32 }
 0x281   : > { %v1722_v58 = vpop.f32.mrf.mxu1 }
 0x282   : > { %1355 = vst.msk [vmem:[%s2411_s22 + $0x24] sm:$0xf] %vm1345_vm1, %v1568_v50  ;;  %v1275_v40 = vmax.f32 %v1243_v36, 0.0  ;;  %v1723_v62 = vadd.f32 %v1722_v58, %v1721_v39 }
 0x283   : > { %v1724_v51 = vpop.f32.mrf.mxu1 }
 0x284   : > { %v1569_v52 = vpack.c.bf16 %v1275_v40, %v1275_v40  ;;  %v1246_v63 = vadd.f32 %v1723_v62, %v1149_v60 }
 0x285   : > { %v1725_v1 = vpop.f32.mrf.mxu1 }
 0x286   : > { %1356 = vst.msk [vmem:[%s2411_s22 + $0x28] sm:$0xf] %vm1345_vm1, %v1569_v52  ;;  %v1276_v5 = vmax.f32 %v1246_v63, 0.0  ;;  %v1726_v41 = vadd.f32 %v1725_v1, %v1724_v51 }
 0x287   : > { %v1727_v53 = vpop.f32.mrf.mxu1 }
 0x288   : > { %v1570_v54 = vpack.c.bf16 %v1276_v5, %v1276_v5  ;;  %v1251_v42 = vadd.f32 %v1726_v41, %v1154_v3 }
 0x289   : > { %v1728_v6 = vpop.f32.mrf.mxu1 }
 0x28a   : > { %1357 = vst.msk [vmem:[%s2411_s22 + $0x2c] sm:$0xf] %vm1345_vm1, %v1570_v54  ;;  %v1277_v9 = vmax.f32 %v1251_v42, 0.0  ;;  %v1729_v11 = vadd.f32 %v1728_v6, %v1727_v53 }
 0x28b   : > { %v1730_v55 = vpop.f32.mrf.mxu1 }
 0x28c   : > { %v1571_v56 = vpack.c.bf16 %v1277_v9, %v1277_v9  ;;  %v1254_v13 = vadd.f32 %v1729_v11, %v1157_v7 }
 0x28d   : > { %v1731_v43 = vpop.f32.mrf.mxu1 }
 0x28e   : > { %1358 = vst.msk [vmem:[%s2411_s22 + $0x30] sm:$0xf] %vm1345_vm1, %v1571_v56  ;;  %v1278_v18 = vmax.f32 %v1254_v13, 0.0  ;;  %v1732_v57 = vadd.f32 %v1731_v43, %v1730_v55 }
 0x28f   : > { %v1733_v59 = vpop.f32.mrf.mxu1 }
 0x290   : > { %v1572_v21 = vpack.c.bf16 %v1278_v18, %v1278_v18  ;;  %v1259_v23 = vadd.f32 %v1732_v57, %v1162_v44 }
 0x291   : > { %v1734_v27 = vpop.f32.mrf.mxu1 }
 0x292   : > { %1359 = vst.msk [vmem:[%s2411_s22 + $0x34] sm:$0xf] %vm1345_vm1, %v1572_v21  ;;  %v1279_v37 = vmax.f32 %v1259_v23, 0.0  ;;  %v1735_v45 = vadd.f32 %v1734_v27, %v1733_v59 }
 0x294   : > { %v1573_v20 = vpack.c.bf16 %v1279_v37, %v1279_v37  ;;  %v1262_v24 = vadd.f32 %v1735_v45, %v1165_v29 }
 0x296   : > { %1360 = vst.msk [vmem:[%s2411_s22 + $0x38] sm:$0xf] %vm1345_vm1, %v1573_v20  ;;  %v1280_v61 = vmax.f32 %v1262_v24, 0.0 }
 0x298   : > { %v1574_v0 = vpack.c.bf16 %v1280_v61, %v1280_v61 }
 0x29a   : > { %1361 = vst.msk [vmem:[%s2411_s22 + $0x3c] sm:$0xf] %vm1345_vm1, %v1574_v0 }
 0x29b PF: > { %p14_p9 = scmp.ge.s32.totalorder %s2052_s20, 6   ;;  %s2504_s15 = smov %s1994_s16 }
 0x29c   : > { %s2505_s16 = smov %s1998_s17  ;;  %s2506_s17 = smov %s2062_s23 }
 0x29d   : > { %s2507_s18 = smov %s2052_s20  ;;  %16 = sbr.rel (!%p14_p9) target bundleno = 3 (0x3), region = 76 }
 0x2a2   :  { %1384 = vsyncpa [#allocation3], 1 }
 0x2a3   :  { %1386 = vsyncpa [#allocation3 + $0x1], 1 }

</bundles_post_ra>
